<compile_context>
chip_gen: v7x
topology: tpu7x:2x2x1
jax: 0.10.0
libtpu: 0.0.40
codegen_flags: <defaults>
</compile_context>

<pallas_src>
import functools

import jax
import jax.numpy as jnp
from jax.experimental import pallas as pl
from jax.experimental.pallas import tpu as pltpu


# ----------------------------------------------------------------------------
# Pallas kernel: fused folding1 + folding2 MLPs, transposed layout (F x TM).
# ----------------------------------------------------------------------------
def _decoder_kernel(
    a1_ref, a2_ref, g_ref,
    w1g_ref,                       # (F, 2)   = w1g^T
    w2_ref, b2_ref,                # (F, F), (F, 1)
    w3_ref, b3_ref,                # (F, F), (F, 1)
    wf_ref,                        # (F, F)   = (w4 @ v1p)^T  (fused layer)
    v2_ref, c2_ref,                # (F, F), (F, 1)
    v3_ref, c3_ref,                # (F, F), (F, 1)
    v4_ref, c4_ref,                # (3, F), (3, 1)
    out_ref,                       # (1, 3, TM)
):
    f32 = jnp.float32
    g = g_ref[...]                 # (2, TM)   grid points (transposed)
    a1 = a1_ref[0]                 # (F, 1)    per-batch x@w1x + b1 (transposed)
    a2 = a2_ref[0]                 # (F, 1)    per-batch x@v1x + c1 + b4@v1p

    # ---- folding1: Linear -> ReLU -> Res -> ReLU -> Res -> ReLU ----
    # First layer: contraction dim is only 2 -> two VPU outer products
    # instead of a padded MXU matmul.
    w1g = w1g_ref[...]             # (F, 2)
    h = w1g[:, 0:1] * g[0:1, :] + w1g[:, 1:2] * g[1:2, :] + a1
    h = jnp.maximum(h, 0.0)
    h = h + (jnp.dot(w2_ref[...], h, preferred_element_type=f32) + b2_ref[...])
    h = jnp.maximum(h, 0.0)
    h = h + (jnp.dot(w3_ref[...], h, preferred_element_type=f32) + b3_ref[...])
    h = jnp.maximum(h, 0.0)

    # ---- folding2: first Linear has folding1's output Linear fused in ----
    h = jnp.dot(wf_ref[...], h, preferred_element_type=f32) + a2
    h = jnp.maximum(h, 0.0)
    h = h + (jnp.dot(v2_ref[...], h, preferred_element_type=f32) + c2_ref[...])
    h = jnp.maximum(h, 0.0)
    h = h + (jnp.dot(v3_ref[...], h, preferred_element_type=f32) + c3_ref[...])
    h = jnp.maximum(h, 0.0)
    f2t = jnp.dot(v4_ref[...], h, preferred_element_type=f32) + c4_ref[...]  # (3, TM)

    out_ref[0] = f2t.astype(out_ref.dtype)     # lane-dense store (3, TM)


def _const_spec(shape):
    """BlockSpec for a small resident weight (same block every grid step)."""
    return pl.BlockSpec(shape, lambda b, t, _n=len(shape): (0,) * _n)


def _pick_tile_m(m, max_tile_m):
    """Largest lane-dense tile along the point axis that divides m."""
    if m <= max_tile_m:
        return m                       # one tile per batch; block == full dim
    t = (max_tile_m // 128) * 128
    while t >= 128:
        if m % t == 0:
            return t
        t -= 128
    return m                           # fallback: single (possibly large) tile


@functools.partial(jax.jit, static_argnames=("max_tile_m",))
def decoder_linear_forward(x, grid_pts, params, *, max_tile_m=4096):
    """x: (B, 1, F) latent; grid_pts: (m, 2) plane points. Returns (B, 3, m)."""
    B = x.shape[0]
    F = x.shape[-1]
    m = grid_pts.shape[0]

    (w1x, w1g, b1, w2, b2, w3, b3, w4, b4,
     v1x, v1p, c1, v2, c2, v3, c3, v4, c4) = params

    # --- wrapper-side algebra (tiny, fused by XLA) ---------------------------
    x2d = x[:, 0, :]                                   # (B, F)
    a1 = x2d @ w1x + b1                                # (B, F)  latent part f1
    a2 = x2d @ v1x + c1 + b4 @ v1p                     # (B, F)  latent part f2 (+fused bias)
    A1 = a1[:, :, None]                                # (B, F, 1) columns
    A2 = a2[:, :, None]
    wf_t = (w4 @ v1p).T                                # (F, F) fused w4@v1p, transposed
    w1g_t = w1g.T                                      # (F, 2)
    w2_t, w3_t = w2.T, w3.T                            # (F, F)
    v2_t, v3_t = v2.T, v3.T                            # (F, F)
    v4_t = v4.T                                        # (3, F)
    b2_c, b3_c = b2.T, b3.T                            # (F, 1)
    c2_c, c3_c = c2.T, c3.T                            # (F, 1)
    c4_c = c4.T                                        # (3, 1)
    gT = grid_pts.T.astype(jnp.float32)                # (2, m) -- shared across batch

    tile_m = _pick_tile_m(m, max_tile_m)
    assert m % tile_m == 0, "point count must be divisible by the chosen tile"
    grid = (B, m // tile_m)

    in_specs = [
        pl.BlockSpec((1, F, 1), lambda b, t: (b, 0, 0)),   # A1 (per batch)
        pl.BlockSpec((1, F, 1), lambda b, t: (b, 0, 0)),   # A2 (per batch)
        pl.BlockSpec((2, tile_m), lambda b, t: (0, t)),    # grid points
        _const_spec((F, 2)),                               # w1g_t
        _const_spec((F, F)), _const_spec((F, 1)),          # w2_t, b2_c
        _const_spec((F, F)), _const_spec((F, 1)),          # w3_t, b3_c
        _const_spec((F, F)),                               # wf_t
        _const_spec((F, F)), _const_spec((F, 1)),          # v2_t, c2_c
        _const_spec((F, F)), _const_spec((F, 1)),          # v3_t, c3_c
        _const_spec((3, F)), _const_spec((3, 1)),          # v4_t, c4_c
    ]

    out = pl.pallas_call(
        _decoder_kernel,
        out_shape=jax.ShapeDtypeStruct((B, 3, m), jnp.float32),
        grid=grid,
        in_specs=in_specs,
        out_specs=pl.BlockSpec((1, 3, tile_m), lambda b, t: (b, 0, t)),
        compiler_params=pltpu.CompilerParams(
            dimension_semantics=("parallel", "parallel")),
    )(A1, A2, gT,
      w1g_t, w2_t, b2_c, w3_t, b3_c,
      wf_t, v2_t, c2_c, v3_t, c3_c, v4_t, c4_c)

    return out    # already (B, 3, m) == folding_result2.transpose(1, 2)


# ----------------------------------------------------------------------------
# Deterministic parameter init + plane meshgrid (Decoder_Block.build_grid).
# ----------------------------------------------------------------------------
def init_params(key, feat_dims):
    F = feat_dims

    def lin(k, fan_in, fan_out):
        kw, kb = jax.random.split(k)
        scale = 1.0 / jnp.sqrt(fan_in)
        w = jax.random.uniform(kw, (fan_in, fan_out), jnp.float32, -scale, scale)
        b = jax.random.uniform(kb, (1, fan_out), jnp.float32, -scale, scale)
        return w, b

    keys = jax.random.split(key, 8)
    # folding1: Linear(F+2, F) split into [W_x; W_g]
    w1_full, b1 = lin(keys[0], F + 2, F)
    w1x, w1g = w1_full[:F], w1_full[F:]
    w2, b2 = lin(keys[1], F, F)
    w3, b3 = lin(keys[2], F, F)
    w4, b4 = lin(keys[3], F, 3)
    # folding2: Linear(F+3, F) split into [V_x; V_p]
    v1_full, c1 = lin(keys[4], F + 3, F)
    v1x, v1p = v1_full[:F], v1_full[F:]
    v2, c2 = lin(keys[5], F, F)
    v3, c3 = lin(keys[6], F, F)
    v4, c4 = lin(keys[7], F, 3)
    return (w1x, w1g, b1, w2, b2, w3, b3, w4, b4,
            v1x, v1p, c1, v2, c2, v3, c3, v4, c4)


def build_plane_grid(num_points_sqrt):
    xs = jnp.linspace(-1.0, 1.0, num_points_sqrt)
    ys = jnp.linspace(-1.0, 1.0, num_points_sqrt)
    gx, gy = jnp.meshgrid(xs, ys, indexing="ij")      # == itertools.product(x, y)
    return jnp.stack([gx, gy], axis=-1).reshape(-1, 2).astype(jnp.float32)


# ----------------------------------------------------------------------------
# Pure-JAX reference (unfused, mirrors the PyTorch module) for correctness.
# ----------------------------------------------------------------------------
def reference_forward(x, grid_pts, params):
    (w1x, w1g, b1, w2, b2, w3, b3, w4, b4,
     v1x, v1p, c1, v2, c2, v3, c3, v4, c4) = params
    B, _, F = x.shape
    m = grid_pts.shape[0]
    xr = jnp.broadcast_to(x, (B, m, F))
    gr = jnp.broadcast_to(grid_pts[None], (B, m, 2))

    def mlp(inp_a, wa, inp_b, wb, b_1, W2, B2, W3, B3, W4, B4):
        h = inp_a @ wa + inp_b @ wb + b_1
        h = jnp.maximum(h, 0.0)
        h = h + (h @ W2 + B2)
        h = jnp.maximum(h, 0.0)
        h = h + (h @ W3 + B3)
        h = jnp.maximum(h, 0.0)
        return h @ W4 + B4

    f1 = mlp(xr, w1x, gr, w1g, b1, w2, b2, w3, b3, w4, b4)
    f2 = mlp(xr, v1x, f1, v1p, c1, v2, c2, v3, c3, v4, c4)
    return f2.transpose(0, 2, 1)   # (B, 3, m)


if __name__ == "__main__":
    B = 2
    feat_dims = 32
    num_points = 256               # num_points_sqrt = 16 -> m = 256 plane points
    m = num_points

    key = jax.random.PRNGKey(0)
    k_x, k_p = jax.random.split(key)

    x = jax.random.normal(k_x, (B, 1, feat_dims), dtype=jnp.float32)   # latent
    grid_pts = build_plane_grid(int(num_points ** 0.5))                # (256, 2)
    params = init_params(k_p, feat_dims)

    out = decoder_linear_forward(x, grid_pts, params)
    out = jax.block_until_ready(out)

    ref = reference_forward(x, grid_pts, params)
    assert out.shape == (B, 3, m)
    max_err = float(jnp.max(jnp.abs(out - ref)))
    assert jnp.allclose(out, ref, atol=1e-4, rtol=1e-4), f"mismatch vs reference ({max_err})"

    # TODO(synk): variance_network branch (self.std) needs knn/local_cov gather
    # ops and is only active after init_std(); not exercised here (std is None).
    # TODO(synk): point_encoding / grid_map branch not exercised (point_encoding=False).
    print("KERNEL_OK")
</pallas_src>

<mosaic_0001>
module attributes {stable_mosaic.version = 11 : i64} {
  func.func @_decoder_kernel(%arg0: i32, %arg1: i32, %arg2: memref<1x32x1xf32, #tpu.memory_space<vmem>>, %arg3: memref<1x32x1xf32, #tpu.memory_space<vmem>>, %arg4: memref<2x256xf32, #tpu.memory_space<vmem>>, %arg5: memref<32x2xf32, #tpu.memory_space<vmem>>, %arg6: memref<32x32xf32, #tpu.memory_space<vmem>>, %arg7: memref<32x1xf32, #tpu.memory_space<vmem>>, %arg8: memref<32x32xf32, #tpu.memory_space<vmem>>, %arg9: memref<32x1xf32, #tpu.memory_space<vmem>>, %arg10: memref<32x32xf32, #tpu.memory_space<vmem>>, %arg11: memref<32x32xf32, #tpu.memory_space<vmem>>, %arg12: memref<32x1xf32, #tpu.memory_space<vmem>>, %arg13: memref<32x32xf32, #tpu.memory_space<vmem>>, %arg14: memref<32x1xf32, #tpu.memory_space<vmem>>, %arg15: memref<3x32xf32, #tpu.memory_space<vmem>>, %arg16: memref<3x1xf32, #tpu.memory_space<vmem>>, %arg17: memref<1x3x256xf32, #tpu.memory_space<vmem>>) attributes {dimension_semantics = [#tpu.dimension_semantics<parallel>, #tpu.dimension_semantics<parallel>], iteration_bounds = array<i64: 2, 1>, scalar_prefetch = 0 : i64, scratch_operands = 0 : i64, tpu.core_type = #tpu.core_type<tc>, window_params = [{transform_indices = @transform_0, window_bounds = array<i64: 1, 32, 1>}, {transform_indices = @transform_1, window_bounds = array<i64: 1, 32, 1>}, {transform_indices = @transform_2, window_bounds = array<i64: 2, 256>}, {pipeline_mode = #tpu.pipeline_mode<synchronous>, transform_indices = @transform_3, window_bounds = array<i64: 32, 2>}, {pipeline_mode = #tpu.pipeline_mode<synchronous>, transform_indices = @transform_4, window_bounds = array<i64: 32, 32>}, {pipeline_mode = #tpu.pipeline_mode<synchronous>, transform_indices = @transform_5, window_bounds = array<i64: 32, 1>}, {pipeline_mode = #tpu.pipeline_mode<synchronous>, transform_indices = @transform_6, window_bounds = array<i64: 32, 32>}, {pipeline_mode = #tpu.pipeline_mode<synchronous>, transform_indices = @transform_7, window_bounds = array<i64: 32, 1>}, {pipeline_mode = #tpu.pipeline_mode<synchronous>, transform_indices = @transform_8, window_bounds = array<i64: 32, 32>}, {pipeline_mode = #tpu.pipeline_mode<synchronous>, transform_indices = @transform_9, window_bounds = array<i64: 32, 32>}, {pipeline_mode = #tpu.pipeline_mode<synchronous>, transform_indices = @transform_10, window_bounds = array<i64: 32, 1>}, {pipeline_mode = #tpu.pipeline_mode<synchronous>, transform_indices = @transform_11, window_bounds = array<i64: 32, 32>}, {pipeline_mode = #tpu.pipeline_mode<synchronous>, transform_indices = @transform_12, window_bounds = array<i64: 32, 1>}, {pipeline_mode = #tpu.pipeline_mode<synchronous>, transform_indices = @transform_13, window_bounds = array<i64: 3, 32>}, {pipeline_mode = #tpu.pipeline_mode<synchronous>, transform_indices = @transform_14, window_bounds = array<i64: 3, 1>}, {transform_indices = @transform_15, window_bounds = array<i64: 1, 3, 256>}]} {
    %c0 = arith.constant 0 : index
    %c0_0 = arith.constant 0 : index
    %0 = vector.load %arg4[%c0, %c0_0] : memref<2x256xf32, #tpu.memory_space<vmem>>, vector<2x256xf32>
    %c0_1 = arith.constant 0 : index
    %c0_2 = arith.constant 0 : index
    %c0_3 = arith.constant 0 : index
    %1 = vector.load %arg2[%c0_1, %c0_2, %c0_3] : memref<1x32x1xf32, #tpu.memory_space<vmem>>, vector<1x32x1xf32>
    %2 = vector.shape_cast %1 : vector<1x32x1xf32> to vector<32x1xf32>
    %c0_4 = arith.constant 0 : index
    %c0_5 = arith.constant 0 : index
    %c0_6 = arith.constant 0 : index
    %3 = vector.load %arg3[%c0_4, %c0_5, %c0_6] : memref<1x32x1xf32, #tpu.memory_space<vmem>>, vector<1x32x1xf32>
    %4 = vector.shape_cast %3 : vector<1x32x1xf32> to vector<32x1xf32>
    %c0_7 = arith.constant 0 : index
    %c0_8 = arith.constant 0 : index
    %5 = vector.load %arg5[%c0_7, %c0_8] : memref<32x2xf32, #tpu.memory_space<vmem>>, vector<32x2xf32>
    %6 = vector.extract_strided_slice %5 {offsets = [0, 0], sizes = [32, 1], strides = [1, 1]} : vector<32x2xf32> to vector<32x1xf32>
    %7 = vector.extract_strided_slice %0 {offsets = [0, 0], sizes = [1, 256], strides = [1, 1]} : vector<2x256xf32> to vector<1x256xf32>
    %8 = vector.broadcast %6 : vector<32x1xf32> to vector<32x256xf32>
    %9 = vector.broadcast %7 : vector<1x256xf32> to vector<32x256xf32>
    %10 = arith.mulf %8, %9 : vector<32x256xf32>
    %11 = vector.extract_strided_slice %5 {offsets = [0, 1], sizes = [32, 1], strides = [1, 1]} : vector<32x2xf32> to vector<32x1xf32>
    %12 = vector.extract_strided_slice %0 {offsets = [1, 0], sizes = [1, 256], strides = [1, 1]} : vector<2x256xf32> to vector<1x256xf32>
    %13 = vector.broadcast %11 : vector<32x1xf32> to vector<32x256xf32>
    %14 = vector.broadcast %12 : vector<1x256xf32> to vector<32x256xf32>
    %15 = arith.mulf %13, %14 : vector<32x256xf32>
    %16 = arith.addf %10, %15 : vector<32x256xf32>
    %17 = vector.broadcast %2 : vector<32x1xf32> to vector<32x256xf32>
    %18 = arith.addf %16, %17 : vector<32x256xf32>
    %cst = arith.constant 0.000000e+00 : f32
    %19 = vector.broadcast %cst : f32 to vector<32x256xf32>
    %20 = arith.maximumf %18, %19 : vector<32x256xf32>
    %c0_9 = arith.constant 0 : index
    %c0_10 = arith.constant 0 : index
    %21 = vector.load %arg6[%c0_9, %c0_10] : memref<32x32xf32, #tpu.memory_space<vmem>>, vector<32x32xf32>
    %cst_11 = arith.constant dense<0.000000e+00> : vector<32x256xf32>
    %22 = tpu.matmul %21, %20, %cst_11 {dimension_numbers = #tpu.dot_dimension_numbers<[1], [0], [0], [1], [0, 0, 1, 1], [], []>} : vector<32x32xf32>, vector<32x256xf32>, vector<32x256xf32> -> vector<32x256xf32>
    %c0_12 = arith.constant 0 : index
    %c0_13 = arith.constant 0 : index
    %23 = vector.load %arg7[%c0_12, %c0_13] : memref<32x1xf32, #tpu.memory_space<vmem>>, vector<32x1xf32>
    %24 = vector.broadcast %23 : vector<32x1xf32> to vector<32x256xf32>
    %25 = arith.addf %22, %24 : vector<32x256xf32>
    %26 = arith.addf %20, %25 : vector<32x256xf32>
    %cst_14 = arith.constant 0.000000e+00 : f32
    %27 = vector.broadcast %cst_14 : f32 to vector<32x256xf32>
    %28 = arith.maximumf %26, %27 : vector<32x256xf32>
    %c0_15 = arith.constant 0 : index
    %c0_16 = arith.constant 0 : index
    %29 = vector.load %arg8[%c0_15, %c0_16] : memref<32x32xf32, #tpu.memory_space<vmem>>, vector<32x32xf32>
    %cst_17 = arith.constant dense<0.000000e+00> : vector<32x256xf32>
    %30 = tpu.matmul %29, %28, %cst_17 {dimension_numbers = #tpu.dot_dimension_numbers<[1], [0], [0], [1], [0, 0, 1, 1], [], []>} : vector<32x32xf32>, vector<32x256xf32>, vector<32x256xf32> -> vector<32x256xf32>
    %c0_18 = arith.constant 0 : index
    %c0_19 = arith.constant 0 : index
    %31 = vector.load %arg9[%c0_18, %c0_19] : memref<32x1xf32, #tpu.memory_space<vmem>>, vector<32x1xf32>
    %32 = vector.broadcast %31 : vector<32x1xf32> to vector<32x256xf32>
    %33 = arith.addf %30, %32 : vector<32x256xf32>
    %34 = arith.addf %28, %33 : vector<32x256xf32>
    %cst_20 = arith.constant 0.000000e+00 : f32
    %35 = vector.broadcast %cst_20 : f32 to vector<32x256xf32>
    %36 = arith.maximumf %34, %35 : vector<32x256xf32>
    %c0_21 = arith.constant 0 : index
    %c0_22 = arith.constant 0 : index
    %37 = vector.load %arg10[%c0_21, %c0_22] : memref<32x32xf32, #tpu.memory_space<vmem>>, vector<32x32xf32>
    %cst_23 = arith.constant dense<0.000000e+00> : vector<32x256xf32>
    %38 = tpu.matmul %37, %36, %cst_23 {dimension_numbers = #tpu.dot_dimension_numbers<[1], [0], [0], [1], [0, 0, 1, 1], [], []>} : vector<32x32xf32>, vector<32x256xf32>, vector<32x256xf32> -> vector<32x256xf32>
    %39 = vector.broadcast %4 : vector<32x1xf32> to vector<32x256xf32>
    %40 = arith.addf %38, %39 : vector<32x256xf32>
    %cst_24 = arith.constant 0.000000e+00 : f32
    %41 = vector.broadcast %cst_24 : f32 to vector<32x256xf32>
    %42 = arith.maximumf %40, %41 : vector<32x256xf32>
    %c0_25 = arith.constant 0 : index
    %c0_26 = arith.constant 0 : index
    %43 = vector.load %arg11[%c0_25, %c0_26] : memref<32x32xf32, #tpu.memory_space<vmem>>, vector<32x32xf32>
    %cst_27 = arith.constant dense<0.000000e+00> : vector<32x256xf32>
    %44 = tpu.matmul %43, %42, %cst_27 {dimension_numbers = #tpu.dot_dimension_numbers<[1], [0], [0], [1], [0, 0, 1, 1], [], []>} : vector<32x32xf32>, vector<32x256xf32>, vector<32x256xf32> -> vector<32x256xf32>
    %c0_28 = arith.constant 0 : index
    %c0_29 = arith.constant 0 : index
    %45 = vector.load %arg12[%c0_28, %c0_29] : memref<32x1xf32, #tpu.memory_space<vmem>>, vector<32x1xf32>
    %46 = vector.broadcast %45 : vector<32x1xf32> to vector<32x256xf32>
    %47 = arith.addf %44, %46 : vector<32x256xf32>
    %48 = arith.addf %42, %47 : vector<32x256xf32>
    %cst_30 = arith.constant 0.000000e+00 : f32
    %49 = vector.broadcast %cst_30 : f32 to vector<32x256xf32>
    %50 = arith.maximumf %48, %49 : vector<32x256xf32>
    %c0_31 = arith.constant 0 : index
    %c0_32 = arith.constant 0 : index
    %51 = vector.load %arg13[%c0_31, %c0_32] : memref<32x32xf32, #tpu.memory_space<vmem>>, vector<32x32xf32>
    %cst_33 = arith.constant dense<0.000000e+00> : vector<32x256xf32>
    %52 = tpu.matmul %51, %50, %cst_33 {dimension_numbers = #tpu.dot_dimension_numbers<[1], [0], [0], [1], [0, 0, 1, 1], [], []>} : vector<32x32xf32>, vector<32x256xf32>, vector<32x256xf32> -> vector<32x256xf32>
    %c0_34 = arith.constant 0 : index
    %c0_35 = arith.constant 0 : index
    %53 = vector.load %arg14[%c0_34, %c0_35] : memref<32x1xf32, #tpu.memory_space<vmem>>, vector<32x1xf32>
    %54 = vector.broadcast %53 : vector<32x1xf32> to vector<32x256xf32>
    %55 = arith.addf %52, %54 : vector<32x256xf32>
    %56 = arith.addf %50, %55 : vector<32x256xf32>
    %cst_36 = arith.constant 0.000000e+00 : f32
    %57 = vector.broadcast %cst_36 : f32 to vector<32x256xf32>
    %58 = arith.maximumf %56, %57 : vector<32x256xf32>
    %c0_37 = arith.constant 0 : index
    %c0_38 = arith.constant 0 : index
    %59 = vector.load %arg15[%c0_37, %c0_38] : memref<3x32xf32, #tpu.memory_space<vmem>>, vector<3x32xf32>
    %cst_39 = arith.constant dense<0.000000e+00> : vector<3x256xf32>
    %60 = tpu.matmul %59, %58, %cst_39 {dimension_numbers = #tpu.dot_dimension_numbers<[1], [0], [0], [1], [0, 0, 1, 1], [], []>} : vector<3x32xf32>, vector<32x256xf32>, vector<3x256xf32> -> vector<3x256xf32>
    %c0_40 = arith.constant 0 : index
    %c0_41 = arith.constant 0 : index
    %61 = vector.load %arg16[%c0_40, %c0_41] : memref<3x1xf32, #tpu.memory_space<vmem>>, vector<3x1xf32>
    %62 = vector.broadcast %61 : vector<3x1xf32> to vector<3x256xf32>
    %63 = arith.addf %60, %62 : vector<3x256xf32>
    %c0_42 = arith.constant 0 : index
    %c0_43 = arith.constant 0 : index
    %c0_44 = arith.constant 0 : index
    %64 = vector.load %arg17[%c0_42, %c0_43, %c0_44] : memref<1x3x256xf32, #tpu.memory_space<vmem>>, vector<1x3x256xf32>
    %65 = vector.shape_cast %64 : vector<1x3x256xf32> to vector<3x256xf32>
    %66 = vector.shape_cast %63 : vector<3x256xf32> to vector<1x3x256xf32>
    tpu.vector_store %arg17[%c0_42, %c0_43, %c0_44], %66 {strides = array<i32>} : memref<1x3x256xf32, #tpu.memory_space<vmem>>, vector<1x3x256xf32>,
    return
  }
  func.func @transform_0(%arg0: i32, %arg1: i32) -> (i32, i32, i32) {
    %c0_i32 = arith.constant 0 : i32
    %c0_i32_0 = arith.constant 0 : i32
    %c0_i32_1 = arith.constant 0 : i32
    return %arg0, %c0_i32, %c0_i32_0 : i32, i32, i32
  }
  func.func @transform_1(%arg0: i32, %arg1: i32) -> (i32, i32, i32) {
    %c0_i32 = arith.constant 0 : i32
    %c0_i32_0 = arith.constant 0 : i32
    %c0_i32_1 = arith.constant 0 : i32
    return %arg0, %c0_i32, %c0_i32_0 : i32, i32, i32
  }
  func.func @transform_2(%arg0: i32, %arg1: i32) -> (i32, i32) {
    %c0_i32 = arith.constant 0 : i32
    %c0_i32_0 = arith.constant 0 : i32
    return %c0_i32, %arg1 : i32, i32
  }
  func.func @transform_3(%arg0: i32, %arg1: i32) -> (i32, i32) {
    %c0_i32 = arith.constant 0 : i32
    %c0_i32_0 = arith.constant 0 : i32
    %c0_i32_1 = arith.constant 0 : i32
    return %c0_i32, %c0_i32_0 : i32, i32
  }
  func.func @transform_4(%arg0: i32, %arg1: i32) -> (i32, i32) {
    %c0_i32 = arith.constant 0 : i32
    %c0_i32_0 = arith.constant 0 : i32
    %c0_i32_1 = arith.constant 0 : i32
    return %c0_i32, %c0_i32_0 : i32, i32
  }
  func.func @transform_5(%arg0: i32, %arg1: i32) -> (i32, i32) {
    %c0_i32 = arith.constant 0 : i32
    %c0_i32_0 = arith.constant 0 : i32
    %c0_i32_1 = arith.constant 0 : i32
    return %c0_i32, %c0_i32_0 : i32, i32
  }
  func.func @transform_6(%arg0: i32, %arg1: i32) -> (i32, i32) {
    %c0_i32 = arith.constant 0 : i32
    %c0_i32_0 = arith.constant 0 : i32
    %c0_i32_1 = arith.constant 0 : i32
    return %c0_i32, %c0_i32_0 : i32, i32
  }
  func.func @transform_7(%arg0: i32, %arg1: i32) -> (i32, i32) {
    %c0_i32 = arith.constant 0 : i32
    %c0_i32_0 = arith.constant 0 : i32
    %c0_i32_1 = arith.constant 0 : i32
    return %c0_i32, %c0_i32_0 : i32, i32
  }
  func.func @transform_8(%arg0: i32, %arg1: i32) -> (i32, i32) {
    %c0_i32 = arith.constant 0 : i32
    %c0_i32_0 = arith.constant 0 : i32
    %c0_i32_1 = arith.constant 0 : i32
    return %c0_i32, %c0_i32_0 : i32, i32
  }
  func.func @transform_9(%arg0: i32, %arg1: i32) -> (i32, i32) {
    %c0_i32 = arith.constant 0 : i32
    %c0_i32_0 = arith.constant 0 : i32
    %c0_i32_1 = arith.constant 0 : i32
    return %c0_i32, %c0_i32_0 : i32, i32
  }
  func.func @transform_10(%arg0: i32, %arg1: i32) -> (i32, i32) {
    %c0_i32 = arith.constant 0 : i32
    %c0_i32_0 = arith.constant 0 : i32
    %c0_i32_1 = arith.constant 0 : i32
    return %c0_i32, %c0_i32_0 : i32, i32
  }
  func.func @transform_11(%arg0: i32, %arg1: i32) -> (i32, i32) {
    %c0_i32 = arith.constant 0 : i32
    %c0_i32_0 = arith.constant 0 : i32
    %c0_i32_1 = arith.constant 0 : i32
    return %c0_i32, %c0_i32_0 : i32, i32
  }
  func.func @transform_12(%arg0: i32, %arg1: i32) -> (i32, i32) {
    %c0_i32 = arith.constant 0 : i32
    %c0_i32_0 = arith.constant 0 : i32
    %c0_i32_1 = arith.constant 0 : i32
    return %c0_i32, %c0_i32_0 : i32, i32
  }
  func.func @transform_13(%arg0: i32, %arg1: i32) -> (i32, i32) {
    %c0_i32 = arith.constant 0 : i32
    %c0_i32_0 = arith.constant 0 : i32
    %c0_i32_1 = arith.constant 0 : i32
    return %c0_i32, %c0_i32_0 : i32, i32
  }
  func.func @transform_14(%arg0: i32, %arg1: i32) -> (i32, i32) {
    %c0_i32 = arith.constant 0 : i32
    %c0_i32_0 = arith.constant 0 : i32
    %c0_i32_1 = arith.constant 0 : i32
    return %c0_i32, %c0_i32_0 : i32, i32
  }
  func.func @transform_15(%arg0: i32, %arg1: i32) -> (i32, i32, i32) {
    %c0_i32 = arith.constant 0 : i32
    %c0_i32_0 = arith.constant 0 : i32
    return %arg0, %c0_i32, %arg1 : i32, i32, i32
  }
}

</mosaic_0001>

<bundles_post_ra>
// kernel: decoder_linear_forward.1
= control target key start
LH: loop header
LB: loop body
LE: loop exit
PB: predicated region body
PF: predicated region fallthrough
CT: control target
= control target key end

     0   :  { %s1844_s18 = smov 0   ;;  %s1846_s19 = smov 0   ;;  %s2091_s0 = inlined_call_operand.vmem [shape: f32[2,32,1], index: 0, kind: input, shape index: {}]   ;;  %s2092_s1 = inlined_call_operand.vmem [shape: f32[2,32,1], index: 1, kind: input, shape index: {}]   ;;  %s2093_s2 = inlined_call_operand.vmem [shape: f32[2,256], index: 2, kind: input, shape index: {}]   ;;  %s2094_s3 = inlined_call_operand.vmem [shape: f32[32,2], index: 3, kind: input, shape index: {}]   ;;  %s2095_s4 = inlined_call_operand.vmem [shape: f32[32,32], index: 4, kind: input, shape index: {}]   ;;  %s2096_s5 = inlined_call_operand.vmem [shape: f32[32,1], index: 5, kind: input, shape index: {}]   ;;  %s2097_s6 = inlined_call_operand.vmem [shape: f32[32,32], index: 6, kind: input, shape index: {}]   ;;  %s2098_s7 = inlined_call_operand.vmem [shape: f32[32,1], index: 7, kind: input, shape index: {}]   ;;  %s2099_s8 = inlined_call_operand.vmem [shape: f32[32,32], index: 8, kind: input, shape index: {}]   ;;  %s2100_s9 = inlined_call_operand.vmem [shape: f32[32,32], index: 9, kind: input, shape index: {}]   ;;  %s2101_s10 = inlined_call_operand.vmem [shape: f32[32,1], index: 10, kind: input, shape index: {}]   ;;  %s2102_s11 = inlined_call_operand.vmem [shape: f32[32,32], index: 11, kind: input, shape index: {}]   ;;  %s2103_s12 = inlined_call_operand.vmem [shape: f32[32,1], index: 12, kind: input, shape index: {}]   ;;  %s2104_s13 = inlined_call_operand.vmem [shape: f32[3,32], index: 13, kind: input, shape index: {}]   ;;  %s2105_s14 = inlined_call_operand.vmem [shape: f32[3,1], index: 14, kind: input, shape index: {}]   ;;  %s2106_s15 = inlined_call_operand.vmem [shape: f32[2,3,256], index: 15, kind: output, shape index: {}]  }
   0x1   :  { %2107 = sst [smem:[#allocation2_spill]] %s2091_s0  ;;  %s1848_s20 = smov 0  }
   0x2 LB: > { %s37_s21 = sadd.s32 1, %s1755_s19  ;;  %p1619_p0 = scmp.ge.s32.totalorder %s1759_s20, 1  ;;  %s1759_s20 = sphi %s1848_s20, %s25_s20   ;;  %s1755_s19 = sphi %s1846_s19, %s2110_s19   ;;  %s1751_s18 = sphi %s1844_s18, %s2109_s18  }
   0x3   : > { %p39_p1 = scmp.ge.s32.totalorder %s37_s21, 2  ;;  %p472_p2 = scmp.lt.s32.totalorder %s1759_s20, 3 }
   0x5   : > { %s2112_s21 = smov (%p39_p1, %s37_s21), 0  ;;  %p473_p3 = pnand %p1619_p0, %p472_p2 }
   0x6   : > { %v571_v0 = vld [vmem:[%s2094_s3 + $0x10] sm:$0xff] (!%p473_p3)  ;;  %v569_v1 = vld [vmem:[%s2094_s3] sm:$0xff] (!%p473_p3)  ;;  %v1761_v2 = vmov (!%p473_p3), 1   ;;  %p534_p4 = scmp.lt.s32.totalorder (!%p473_p3), %s1751_s18, 1  ;;  %v570_v3 = vld [vmem:[%s2094_s3 + $0x8] sm:$0xff] (!%p473_p3)  ;;  %v1762_v4 = vmov (!%p473_p3), 0   ;;  %v594_v32 = vlaneseq (!%p473_p3) }
   0x7   : > { %476 = sbr.rel (%p473_p3) target bundleno = 1570 (0x622), region = 80  ;;  %1733 = vset.pattern.permute.xlu0 (!%p473_p3), %v1761_v2  ;;  %1731 = vset.pattern.permute.xlu1 (!%p473_p3), %v1761_v2  ;;  %v572_v5 = vld [vmem:[%s2094_s3 + $0x18] sm:$0xff] (!%p473_p3)  ;;  %s2108_s0 = sld [smem:[#allocation2_spill]] (!%p473_p3)  ;;  %v710_v8 = vld [vmem:[%s2096_s5] sm:$0xff] (!%p473_p3)  ;;  %v712_v10 = vld [vmem:[%s2096_s5 + $0x10] sm:$0xff] (!%p473_p3)  ;;  %v1763_v17 = vmov (!%p473_p3), 0.0  }
   0x8   : > { %629 = vperm.xlu0 (!%p473_p3), %1733, %v571_v0   ;;  %621 = vperm.xlu1 (!%p473_p3), %1731, %v569_v1   ;;  %v856_v12 = vld [vmem:[%s2098_s7] sm:$0xff] (!%p473_p3)  ;;  %v711_v13 = vld [vmem:[%s2096_s5 + $0x8] sm:$0xff] (!%p473_p3)  ;;  %v858_v14 = vld [vmem:[%s2098_s7 + $0x10] sm:$0xff] (!%p473_p3)  ;;  %v595_v33 = vshrl.u32 (!%p473_p3), %v594_v32, 7  ;;  %vm734_vm0 = vcmask (!%p473_p3), 261120  }
   0x9   : > { %v713_v15 = vld [vmem:[%s2096_s5 + $0x18] sm:$0xff] (!%p473_p3)  ;;  %811 = vmatprep.mubr.f32.mxu0 (!%p473_p3), %v1763_v17  ;;  %v857_v18 = vld [vmem:[%s2098_s7 + $0x8] sm:$0xff] (!%p473_p3)  ;;  %823 = vmatprep.mubr.f32.mxu1 (!%p473_p3), %v1763_v17  ;;  %v1134_v21 = vld [vmem:[%s2101_s10] sm:$0xff] (!%p473_p3) }
   0xa   : > { %v859_v20 = vld [vmem:[%s2098_s7 + $0x18] sm:$0xff] (!%p473_p3)  ;;  %v1136_v23 = vld [vmem:[%s2101_s10 + $0x10] sm:$0xff] (!%p473_p3)  ;;  %v1279_v25 = vld [vmem:[%s2103_s12] sm:$0xff] (!%p473_p3)  ;;  %v596_v36 = vsub.s32 (!%p473_p3), 0, %v595_v33  ;;  %v600_v37 = vsub.s32 (!%p473_p3), 2, %v595_v33  ;;  %v638_v38 = vsub.s32 (!%p473_p3), 1, %v595_v33 }
   0xb   : > { %v1135_v26 = vld [vmem:[%s2101_s10 + $0x8] sm:$0xff] (!%p473_p3)  ;;  %v1281_v27 = vld [vmem:[%s2103_s12 + $0x10] sm:$0xff] (!%p473_p3)  ;;  %v1137_v28 = vld [vmem:[%s2101_s10 + $0x18] sm:$0xff] (!%p473_p3)  ;;  %v642_v39 = vsub.s32 (!%p473_p3), 3, %v595_v33 }
   0xc   : > { %1734 = vset.pattern.permute.xlu0 (!%p473_p3), %v1762_v4  ;;  %625 = vperm.xlu1 (!%p473_p3), %1731, %v570_v3   ;;  %v1421_v29 = vld [vmem:[%s2105_s14] sm:$0x7] (!%p473_p3)  ;;  %v1280_v30 = vld [vmem:[%s2103_s12 + $0x8] sm:$0xff] (!%p473_p3)  ;;  %v1282_v31 = vld [vmem:[%s2103_s12 + $0x18] sm:$0xff] (!%p473_p3) }
   0xd   : > { %575 = vperm.xlu0 (!%p473_p3), %1734, %v569_v1   ;;  %v560_v41 = vld [vmem:[%s2093_s2] sm:$0xf] (!%p473_p3) }
   0xe   : > { %s2114_s18 = smov (!%p534_p4, %s1751_s18), 1  ;;  %v597_v43 = vrot.slane %v560_v41, %v596_v36  ;;  %v601_v44 = vrot.slane %v560_v41, %v600_v37  ;;  %v639_v45 = vrot.slane %v560_v41, %v638_v38  ;;  %v643_v46 = vrot.slane %v560_v41, %v642_v39  ;;  %v708_v41 = vld [vmem:[%s2095_s4 + $0x10] sm:$0xff] }
   0xf   : > { %s1649_s30 = sshll.u32 %s2114_s18, 5  ;;  %s1651_s17 = sshll.u32 %s2114_s18, 3 }
  0x10   : > { %1732 = vset.pattern.permute.xlu1 %v1762_v4  ;;  %s538_s22 = scalar_lea.vmem %s2108_s0, %s1649_s30  ;;  %v607_v49 = vrot.slane %v597_v43, %v596_v36  ;;  %v611_v50 = vrot.slane %v601_v44, %v596_v36  ;;  %v649_v51 = vrot.slane %v639_v45, %v638_v38  ;;  %v653_v52 = vrot.slane %v643_v46, %v638_v38  ;;  %v709_v43 = vld [vmem:[%s2095_s4 + $0x18] sm:$0xff]  ;;  %s558_s25 = scalar_lea.vmem %s2106_s15, %s1651_s17 }
  0x11   : > { %580 = vperm.xlu0 %1734, %v570_v3   ;;  %590 = vperm.xlu1 %1732, %v572_v5   ;;  %v562_v6 = vld [vmem:[%s538_s22 + $0x8] sm:$0xff]  ;;  %v561_v7 = vld [vmem:[%s538_s22] sm:$0xff]  ;;  %v563_v9 = vld [vmem:[%s538_s22 + $0x10] sm:$0xff] }
  0x12   : > { %v564_v11 = vld [vmem:[%s538_s22 + $0x18] sm:$0xff]  ;;  %s543_s22 = scalar_lea.vmem %s2092_s1, %s1649_s30 }
  0x13   : > { %v565_v16 = vld [vmem:[%s543_s22] sm:$0xff]  ;;  %v567_v19 = vld [vmem:[%s543_s22 + $0x10] sm:$0xff]  ;;  %v566_v22 = vld [vmem:[%s543_s22 + $0x8] sm:$0xff] }
  0x14   : > { %v568_v24 = vld [vmem:[%s543_s22 + $0x18] sm:$0xff] }
  0x15   : > { %585 = vperm.xlu0 %1734, %v571_v0   ;;  %1735 = vset.pattern.permute.xlu1 %v1761_v2 }
  0x16   : > { %633 = vperm.xlu1 %1735, %v572_v5  }
  0x19   : > { %677 = vperm.xlu0 %1734, %v562_v6  }
  0x1a   : > { %1736 = vset.pattern.permute.xlu1 %v1762_v4 }
  0x1b   : > { %672 = vperm.xlu1 %1736, %v561_v7  }
  0x1d   : > { %716 = vperm.xlu0 %1734, %v710_v8  }
  0x1f   : > { %682 = vperm.xlu1 %1736, %v563_v9  }
  0x21   : > { %726 = vperm.xlu0 %1734, %v712_v10  }
  0x23   : > { %687 = vperm.xlu1 %1736, %v564_v11  }
  0x25   : > { %862 = vperm.xlu0 %1734, %v856_v12  }
  0x27   : > { %721 = vperm.xlu1 %1736, %v711_v13  }
  0x29   : > { %872 = vperm.xlu0 %1734, %v858_v14  }
  0x2b   : > { %731 = vperm.xlu1 %1736, %v713_v15  }
  0x2d   : > { %1003 = vperm.xlu0 %1734, %v565_v16  }
  0x2f   : > { %867 = vperm.xlu1 %1736, %v857_v18  }
  0x31   : > { %1013 = vperm.xlu0 %1734, %v567_v19  }
  0x33   : > { %877 = vperm.xlu1 %1736, %v859_v20  }
  0x35   : > { %1140 = vperm.xlu0 %1734, %v1134_v21  }
  0x37   : > { %1008 = vperm.xlu1 %1736, %v566_v22  }
  0x39   : > { %1150 = vperm.xlu0 %1734, %v1136_v23  }
  0x3b   : > { %1018 = vperm.xlu1 %1736, %v568_v24  }
  0x3d   : > { %1285 = vperm.xlu0 %1734, %v1279_v25  }
  0x3f   : > { %1145 = vperm.xlu1 %1736, %v1135_v26  }
  0x41   : > { %1295 = vperm.xlu0 %1734, %v1281_v27  }
  0x43   : > { %1155 = vperm.xlu1 %1736, %v1137_v28  }
  0x45   : > { %1424 = vperm.xlu0 %1734, %v1421_v29  }
  0x47   : > { %1290 = vperm.xlu1 %1736, %v1280_v30  }
  0x4b   : > { %1300 = vperm.xlu1 %1736, %v1282_v31  }
  0x87   : > { %v622_v34 = vpop.permute.xlu1 %621  ;;  %v630_v35 = vpop.permute.xlu0 %629 }
  0x88   : > { %v654_v61 = vmul.f32 %v649_v51, %v622_v34  ;;  %v655_v62 = vmul.f32 %v653_v52, %v622_v34  ;;  %v658_v11 = vmul.f32 %v649_v51, %v630_v35  ;;  %v659_v12 = vmul.f32 %v653_v52, %v630_v35 }
  0x8b   : > { %v626_v40 = vpop.permute.xlu1 %625 }
  0x8c   : > { %v576_v42 = vpop.permute.xlu0 %575  ;;  %v656_v56 = vmul.f32 %v649_v51, %v626_v40  ;;  %v657_v57 = vmul.f32 %v653_v52, %v626_v40  ;;  %v706_v40 = vld [vmem:[%s2095_s4] sm:$0xff] }
  0x8d   : > { %v612_v58 = vmul.f32 %v607_v49, %v576_v42  ;;  %v613_v59 = vmul.f32 %v611_v50, %v576_v42  ;;  %v707_v42 = vld [vmem:[%s2095_s4 + $0x8] sm:$0xff] }
  0x8f   : > { %v662_v4 = vadd.f32 %v654_v61, %v612_v58  ;;  %v663_v5 = vadd.f32 %v655_v62, %v613_v59 }
  0x90   : > { %v581_v47 = vpop.permute.xlu0 %580  ;;  %v591_v48 = vpop.permute.xlu1 %590 }
  0x91   : > { %v614_v53 = vmul.f32 %v607_v49, %v581_v47  ;;  %v615_v54 = vmul.f32 %v611_v50, %v581_v47  ;;  %v618_v20 = vmul.f32 %v607_v49, %v591_v48  ;;  %v619_v21 = vmul.f32 %v611_v50, %v591_v48 }
  0x93   : > { %v664_v63 = vadd.f32 %v656_v56, %v614_v53  ;;  %v665_v0 = vadd.f32 %v657_v57, %v615_v54 }
  0x94   : > { %v586_v55 = vpop.permute.xlu0 %585 }
  0x95   : > { %v634_v60 = vpop.permute.xlu1 %633  ;;  %v616_v7 = vmul.f32 %v607_v49, %v586_v55  ;;  %v617_v8 = vmul.f32 %v611_v50, %v586_v55 }
  0x96   : > { %v660_v13 = vmul.f32 %v649_v51, %v634_v60  ;;  %v661_v14 = vmul.f32 %v653_v52, %v634_v60 }
  0x97   : > { %v666_v23 = vadd.f32 %v658_v11, %v616_v7  ;;  %v667_v24 = vadd.f32 %v659_v12, %v617_v8 }
  0x98   : > { %v678_v1 = vpop.permute.xlu0 %677  ;;  %v668_v27 = vadd.f32 %v660_v13, %v618_v20  ;;  %v669_v30 = vadd.f32 %v661_v14, %v619_v21  ;;  %v852_v21 = vld [vmem:[%s2097_s6] sm:$0xff] }
  0x99   : > { %v1939_v2 = vadd.f32 %v678_v1, %v664_v63  ;;  %v1941_v3 = vadd.f32 %v678_v1, %v665_v0 }
  0x9a   : > { %v673_v6 = vpop.permute.xlu1 %672 }
  0x9b   : > { %v1943_v9 = vadd.f32 %v673_v6, %v662_v4  ;;  %v1945_v10 = vadd.f32 %v673_v6, %v663_v5  ;;  %v700_v15 = vmax.f32 %v1939_v2, 0.0  ;;  %v701_v16 = vmax.f32 %v1941_v3, 0.0 }
  0x9c   : > { %v717_v44 = vpop.permute.xlu0 %716 }
  0x9d   : > { %v698_v18 = vmax.f32 %v1943_v9, 0.0  ;;  %v699_v19 = vmax.f32 %v1945_v10, 0.0 }
  0x9e   : > { %v683_v22 = vpop.permute.xlu1 %682 }
  0x9f   : > { %v1652_v25 = vpack.c.bf16 %v701_v16, %v699_v19  ;;  %v1654_v26 = vpack.c.bf16 %v700_v15, %v698_v18  ;;  %v1957_v28 = vadd.f32 %v683_v22, %v666_v23  ;;  %v695_v29 = vadd.f32 %v683_v22, %v667_v24  ;;  %v853_v22 = vld [vmem:[%s2097_s6 + $0x8] sm:$0xff]  ;;  %v854_v23 = vld [vmem:[%s2097_s6 + $0x10] sm:$0xff]  ;;  %v855_v24 = vld [vmem:[%s2097_s6 + $0x18] sm:$0xff] }
  0xa0   : > { %v727_v51 = vpop.permute.xlu0 %726 }
  0xa1   : > { %1653 = vmatprep.subr.bf16.mxu0 %v1652_v25  ;;  %1700 = vmatprep.subr.bf16.mxu1 %v1652_v25  ;;  %v702_v34 = vmax.f32 %v1957_v28, 0.0  ;;  %v703_v35 = vmax.f32 %v695_v29, 0.0 }
  0xa2   : > { %1655 = vmatpush1.bf16.msra.mxu0 %v1654_v26  ;;  %1702 = vmatpush1.bf16.msra.mxu1 %v1654_v26  ;;  %v688_v31 = vpop.permute.xlu1 %687 }
  0xa3   : > { %v696_v32 = vadd.f32 %v688_v31, %v668_v27  ;;  %v697_v33 = vadd.f32 %v688_v31, %v669_v30 }
  0xa4   : > { %v863_v25 = vpop.permute.xlu0 %862 }
  0xa5   : > { %v704_v36 = vmax.f32 %v696_v32, 0.0  ;;  %v705_v37 = vmax.f32 %v697_v33, 0.0 }
  0xa6   : > { %v722_v45 = vpop.permute.xlu1 %721 }
  0xa7   : > { %v1656_v38 = vpack.c.bf16 %v705_v37, %v703_v35  ;;  %v1658_v39 = vpack.c.bf16 %v704_v36, %v702_v34 }
  0xa9   : > { %1657 = vmatprep.subr.bf16.mxu0 %v1656_v38  ;;  %1701 = vmatprep.subr.bf16.mxu1 %v1656_v38  ;;  %v873_v38 = vpop.permute.xlu0 %872 }
  0xaa   : > { %1659 = vmatpush1.bf16.msra.mxu0 %v1658_v39  ;;  %1703 = vmatpush1.bf16.msra.mxu1 %v1658_v39  ;;  %v732_v52 = vpop.permute.xlu1 %731 }
  0xad   : > { %1626 = vmatmul.mubr.msk.f32.vlgmr.msra.gmra.mrb[0].mxu0 %vm734_vm0, %v706_v40  ;;  %1628 = vmatmul.mubr.msk.f32.vlgmr.msra.gmra.mrb[0].mxu1 %vm734_vm0, %v708_v41 }
  0xae   : > { %817 = vmatprep.mubr.f32.mxu0 %v1763_v17  ;;  %829 = vmatprep.mubr.f32.mxu1 %v1763_v17  ;;  %v868_v30 = vpop.permute.xlu1 %867 }
  0xb1   : > { %1627 = vmatmul.mubr.msk.f32.gmra.mrb[2].mxu0 %vm734_vm0, %v707_v42  ;;  %1629 = vmatmul.mubr.msk.f32.gmra.mrb[2].mxu1 %vm734_vm0, %v709_v43 }
  0xb2   : > { %956 = vmatprep.mubr.f32.mxu1 %v1763_v17  ;;  %1097 = vmatprep.mubr.f32.mxu0 %v1763_v17 }
 0x180   : > { %v813_v46 = vpop.f32.mrb[0].mxu0  ;;  %v825_v47 = vpop.f32.mrb[0].mxu1 }
 0x181   : > { %v815_v48 = vpop.f32.mrb[1].mxu0  ;;  %v827_v49 = vpop.f32.mrb[1].mxu1  ;;  %v814_v53 = vadd.f32 %v813_v46, %v717_v44  ;;  %v826_v1 = vadd.f32 %v825_v47, %v727_v51 }
 0x182   : > { %v816_v50 = vadd.f32 %v815_v48, %v717_v44  ;;  %v828_v54 = vadd.f32 %v827_v49, %v727_v51  ;;  %v878_v49 = vpop.permute.xlu1 %877 }
 0x183   : > { %v836_v0 = vadd.f32 %v814_v53, %v698_v18  ;;  %v840_v14 = vadd.f32 %v826_v1, %v702_v34  ;;  %v997_v1 = vld [vmem:[%s2099_s8] sm:$0xff] }
 0x184   : > { %v819_v55 = vpop.f32.mrb[2].mxu0  ;;  %v831_v56 = vpop.f32.mrb[2].mxu1  ;;  %v837_v61 = vadd.f32 %v816_v50, %v699_v19  ;;  %v1984_v5 = vadd.f32 %v828_v54, %v703_v35 }
 0x185   : > { %v820_v57 = vadd.f32 %v819_v55, %v722_v45  ;;  %v832_v58 = vadd.f32 %v831_v56, %v732_v52  ;;  %v821_v59 = vpop.f32.mrb[3].mxu0  ;;  %v833_v60 = vpop.f32.mrb[3].mxu1  ;;  %v844_v9 = vmax.f32 %v836_v0, 0.0 }
 0x186   : > { %v822_v62 = vadd.f32 %v821_v59, %v722_v45  ;;  %v834_v63 = vadd.f32 %v833_v60, %v732_v52  ;;  %v845_v11 = vmax.f32 %v837_v61, 0.0  ;;  %v849_v18 = vmax.f32 %v1984_v5, 0.0  ;;  %v999_v5 = vld [vmem:[%s2099_s8 + $0x10] sm:$0xff] }
 0x187   : > { %v838_v4 = vadd.f32 %v820_v57, %v700_v15  ;;  %v1990_v10 = vadd.f32 %v832_v58, %v704_v36 }
 0x188   : > { %v839_v6 = vadd.f32 %v822_v62, %v701_v16  ;;  %v1988_v7 = vadd.f32 %v834_v63, %v705_v37  ;;  %v848_v16 = vmax.f32 %v840_v14, 0.0 }
 0x189   : > { %v846_v8 = vmax.f32 %v838_v4, 0.0  ;;  %v850_v19 = vmax.f32 %v1990_v10, 0.0  ;;  %v998_v4 = vld [vmem:[%s2099_s8 + $0x8] sm:$0xff]  ;;  %v1004_v10 = vpop.permute.xlu0 %1003 }
 0x18a   : > { %v847_v12 = vmax.f32 %v839_v6, 0.0  ;;  %v851_v13 = vmax.f32 %v1988_v7, 0.0  ;;  %v1000_v6 = vld [vmem:[%s2099_s8 + $0x18] sm:$0xff] }
 0x18b   : > { %v1662_v15 = vpack.c.bf16 %v846_v8, %v844_v9  ;;  %v1666_v20 = vpack.c.bf16 %v850_v19, %v848_v16 }
 0x18c   : > { %v1660_v2 = vpack.c.bf16 %v847_v12, %v845_v11  ;;  %v1664_v3 = vpack.c.bf16 %v851_v13, %v849_v18 }
 0x18e   : > { %1661 = vmatprep.subr.bf16.mxu1 %v1660_v2 }
 0x18f   : > { %1663 = vmatpush1.bf16.msra.mxu1 %v1662_v15 }
 0x190   : > { %1665 = vmatprep.subr.bf16.mxu1 %v1664_v3 }
 0x193   : > { %1667 = vmatpush1.bf16.msra.mxu1 %v1666_v20 }
 0x196   : > { %1630 = vmatmul.mubr.msk.f32.vlgmr.msra.gmra.mrb[4].mxu1 %vm734_vm0, %v852_v21 }
 0x197   : > { %962 = vmatprep.mubr.f32.mxu1 %v1763_v17 }
 0x19a   : > { %1631 = vmatmul.mubr.msk.f32.gmra.mrb[6].mxu1 %vm734_vm0, %v853_v22 }
 0x19b   : > { %968 = vmatprep.mubr.f32.mxu1 %v1763_v17 }
 0x19e   : > { %1632 = vmatmul.mubr.msk.f32.gmra.mrb[8].mxu1 %vm734_vm0, %v854_v23  ;;  %v1014_v23 = vpop.permute.xlu0 %1013 }
 0x19f   : > { %974 = vmatprep.mubr.f32.mxu1 %v1763_v17 }
 0x1a2   : > { %1633 = vmatmul.mubr.msk.f32.gmra.mrb[10].mxu1 %vm734_vm0, %v855_v24 }
 0x1a3   : > { %1234 = vmatprep.mubr.f32.mxu1 %v1763_v17 }
 0x269   : > { %v958_v26 = vpop.f32.mrb[4].mxu1 }
 0x26a   : > { %v959_v27 = vadd.f32 %v958_v26, %v863_v25  ;;  %v960_v28 = vpop.f32.mrb[5].mxu1 }
 0x26b   : > { %v961_v29 = vadd.f32 %v960_v28, %v863_v25 }
 0x26c   : > { %v981_v32 = vadd.f32 %v959_v27, %v844_v9 }
 0x26d   : > { %v964_v31 = vpop.f32.mrb[6].mxu1  ;;  %v982_v35 = vadd.f32 %v961_v29, %v845_v11  ;;  %v1009_v11 = vpop.permute.xlu1 %1008 }
 0x26e   : > { %v965_v33 = vadd.f32 %v964_v31, %v868_v30  ;;  %v966_v34 = vpop.f32.mrb[7].mxu1  ;;  %v989_v41 = vmax.f32 %v981_v32, 0.0 }
 0x26f   : > { %v967_v36 = vadd.f32 %v966_v34, %v868_v30  ;;  %v990_v45 = vmax.f32 %v982_v35, 0.0 }
 0x270   : > { %v983_v37 = vadd.f32 %v965_v33, %v846_v8 }
 0x271   : > { %v984_v39 = vadd.f32 %v967_v36, %v847_v12  ;;  %v970_v40 = vpop.f32.mrb[8].mxu1  ;;  %v1019_v25 = vpop.permute.xlu1 %1018 }
 0x272   : > { %v991_v42 = vmax.f32 %v983_v37, 0.0  ;;  %v971_v43 = vadd.f32 %v970_v40, %v873_v38  ;;  %v972_v44 = vpop.f32.mrb[9].mxu1  ;;  %v1132_v40 = vld [vmem:[%s2100_s9 + $0x10] sm:$0xff] }
 0x273   : > { %v992_v46 = vmax.f32 %v984_v39, 0.0  ;;  %v973_v47 = vadd.f32 %v972_v44, %v873_v38  ;;  %v1130_v38 = vld [vmem:[%s2100_s9] sm:$0xff]  ;;  %v1131_v39 = vld [vmem:[%s2100_s9 + $0x8] sm:$0xff] }
 0x274   : > { %v1670_v48 = vpack.c.bf16 %v991_v42, %v989_v41  ;;  %v985_v52 = vadd.f32 %v971_v43, %v848_v16  ;;  %v1133_v41 = vld [vmem:[%s2100_s9 + $0x18] sm:$0xff]  ;;  %v1141_v43 = vpop.permute.xlu0 %1140 }
 0x275   : > { %v976_v50 = vpop.f32.mrb[10].mxu1  ;;  %v1668_v51 = vpack.c.bf16 %v992_v46, %v990_v45  ;;  %v986_v55 = vadd.f32 %v973_v47, %v849_v18  ;;  %v1146_v47 = vpop.permute.xlu1 %1145 }
 0x276   : > { %v977_v53 = vadd.f32 %v976_v50, %v878_v49  ;;  %v978_v54 = vpop.f32.mrb[11].mxu1  ;;  %v993_v59 = vmax.f32 %v985_v52, 0.0 }
 0x277   : > { %v979_v56 = vadd.f32 %v978_v54, %v878_v49  ;;  %1669 = vmatprep.subr.bf16.mxu0 %v1668_v51  ;;  %v994_v61 = vmax.f32 %v986_v55, 0.0 }
 0x278   : > { %v987_v57 = vadd.f32 %v977_v53, %v850_v19  ;;  %1671 = vmatpush1.bf16.msra.mxu0 %v1670_v48 }
 0x279   : > { %v988_v58 = vadd.f32 %v979_v56, %v851_v13 }
 0x27a   : > { %v995_v60 = vmax.f32 %v987_v57, 0.0  ;;  %v1151_v57 = vpop.permute.xlu0 %1150 }
 0x27b   : > { %v996_v62 = vmax.f32 %v988_v58, 0.0 }
 0x27c   : > { %v1674_v63 = vpack.c.bf16 %v995_v60, %v993_v59 }
 0x27d   : > { %v1672_v0 = vpack.c.bf16 %v996_v62, %v994_v61 }
 0x27f   : > { %1673 = vmatprep.subr.bf16.mxu0 %v1672_v0 }
 0x280   : > { %1675 = vmatpush1.bf16.msra.mxu0 %v1674_v63 }
 0x283   : > { %1634 = vmatmul.mubr.msk.f32.vlgmr.msra.gmra.mrb[4].mxu0 %vm734_vm0, %v997_v1  ;;  %v1156_v1 = vpop.permute.xlu1 %1155 }
 0x284   : > { %1103 = vmatprep.mubr.f32.mxu0 %v1763_v17 }
 0x287   : > { %1635 = vmatmul.mubr.msk.f32.gmra.mrb[6].mxu0 %vm734_vm0, %v998_v4 }
 0x288   : > { %1109 = vmatprep.mubr.f32.mxu0 %v1763_v17 }
 0x28b   : > { %1636 = vmatmul.mubr.msk.f32.gmra.mrb[8].mxu0 %vm734_vm0, %v999_v5 }
 0x28c   : > { %1115 = vmatprep.mubr.f32.mxu0 %v1763_v17 }
 0x28f   : > { %1637 = vmatmul.mubr.msk.f32.gmra.mrb[10].mxu0 %vm734_vm0, %v1000_v6 }
 0x290   : > { %1379 = vmatprep.mubr.f32.mxu0 %v1763_v17 }
 0x356   : > { %v1099_v7 = vpop.f32.mrb[4].mxu0 }
 0x357   : > { %v1101_v8 = vpop.f32.mrb[5].mxu0  ;;  %v1100_v9 = vadd.f32 %v1099_v7, %v1004_v10 }
 0x358   : > { %v1102_v12 = vadd.f32 %v1101_v8, %v1004_v10 }
 0x359   : > { %v1122_v20 = vmax.f32 %v1100_v9, 0.0 }
 0x35a   : > { %v1105_v13 = vpop.f32.mrb[6].mxu0  ;;  %v1123_v19 = vmax.f32 %v1102_v12, 0.0 }
 0x35b   : > { %v1106_v14 = vadd.f32 %v1105_v13, %v1009_v11  ;;  %v1107_v18 = vpop.f32.mrb[7].mxu0 }
 0x35c   : > { %v1108_v2 = vadd.f32 %v1107_v18, %v1009_v11 }
 0x35d   : > { %v1124_v15 = vmax.f32 %v1106_v14, 0.0 }
 0x35e   : > { %v1125_v3 = vmax.f32 %v1108_v2, 0.0  ;;  %v1111_v16 = vpop.f32.mrb[8].mxu0 }
 0x35f   : > { %v1113_v21 = vpop.f32.mrb[9].mxu0  ;;  %v1678_v24 = vpack.c.bf16 %v1124_v15, %v1122_v20  ;;  %v1112_v28 = vadd.f32 %v1111_v16, %v1014_v23  ;;  %v1275_v16 = vld [vmem:[%s2102_s11] sm:$0xff] }
 0x360   : > { %v1676_v22 = vpack.c.bf16 %v1125_v3, %v1123_v19  ;;  %v1114_v26 = vadd.f32 %v1113_v21, %v1014_v23  ;;  %v1277_v21 = vld [vmem:[%s2102_s11 + $0x10] sm:$0xff]  ;;  %v1286_v23 = vpop.permute.xlu0 %1285 }
 0x361   : > { %v1126_v35 = vmax.f32 %v1112_v28, 0.0  ;;  %v1291_v28 = vpop.permute.xlu1 %1290 }
 0x362   : > { %v1117_v27 = vpop.f32.mrb[10].mxu0  ;;  %1677 = vmatprep.subr.bf16.mxu1 %v1676_v22  ;;  %v1127_v33 = vmax.f32 %v1114_v26, 0.0  ;;  %v1278_v22 = vld [vmem:[%s2102_s11 + $0x18] sm:$0xff] }
 0x363   : > { %v1118_v29 = vadd.f32 %v1117_v27, %v1019_v25  ;;  %v1119_v30 = vpop.f32.mrb[11].mxu0  ;;  %1679 = vmatpush1.bf16.msra.mxu1 %v1678_v24 }
 0x364   : > { %v1120_v31 = vadd.f32 %v1119_v30, %v1019_v25 }
 0x365   : > { %v1128_v32 = vmax.f32 %v1118_v29, 0.0 }
 0x366   : > { %v1129_v34 = vmax.f32 %v1120_v31, 0.0 }
 0x367   : > { %v1682_v37 = vpack.c.bf16 %v1128_v32, %v1126_v35 }
 0x368   : > { %v1680_v36 = vpack.c.bf16 %v1129_v34, %v1127_v33 }
 0x36a   : > { %1681 = vmatprep.subr.bf16.mxu1 %v1680_v36 }
 0x36b   : > { %1683 = vmatpush1.bf16.msra.mxu1 %v1682_v37 }
 0x36e   : > { %1638 = vmatmul.mubr.msk.f32.vlgmr.msra.gmra.mrb[12].mxu1 %vm734_vm0, %v1130_v38 }
 0x36f   : > { %1240 = vmatprep.mubr.f32.mxu1 %v1763_v17 }
 0x372   : > { %1639 = vmatmul.mubr.msk.f32.gmra.mrb[14].mxu1 %vm734_vm0, %v1131_v39 }
 0x373   : > { %1246 = vmatprep.mubr.f32.mxu1 %v1763_v17 }
 0x376   : > { %1640 = vmatmul.mubr.msk.f32.gmra.mrb[16].mxu1 %vm734_vm0, %v1132_v40 }
 0x377   : > { %1252 = vmatprep.mubr.f32.mxu1 %v1763_v17 }
 0x37a   : > { %1641 = vmatmul.mubr.msk.f32.gmra.mrb[18].mxu1 %vm734_vm0, %v1133_v41 }
 0x37b   : > { %1494 = vmatprep.mubr.f32.mxu1 %v1763_v17 }
 0x441   : > { %v1236_v42 = vpop.f32.mrb[12].mxu1 }
 0x442   : > { %v1238_v44 = vpop.f32.mrb[13].mxu1  ;;  %v1237_v46 = vadd.f32 %v1236_v42, %v1141_v43 }
 0x443   : > { %v1239_v45 = vadd.f32 %v1238_v44, %v1141_v43 }
 0x444   : > { %v1259_v53 = vadd.f32 %v1237_v46, %v1122_v20  ;;  %v1276_v20 = vld [vmem:[%s2102_s11 + $0x8] sm:$0xff]  ;;  %v1301_v46 = vpop.permute.xlu1 %1300 }
 0x445   : > { %v1242_v48 = vpop.f32.mrb[14].mxu1  ;;  %v1260_v51 = vadd.f32 %v1239_v45, %v1123_v19 }
 0x446   : > { %v1243_v49 = vadd.f32 %v1242_v48, %v1146_v47  ;;  %v1244_v50 = vpop.f32.mrb[15].mxu1  ;;  %v1267_v63 = vmax.f32 %v1259_v53, 0.0 }
 0x447   : > { %v1245_v52 = vadd.f32 %v1244_v50, %v1146_v47  ;;  %v1268_v60 = vmax.f32 %v1260_v51, 0.0 }
 0x448   : > { %v1261_v54 = vadd.f32 %v1243_v49, %v1124_v15 }
 0x449   : > { %v1262_v55 = vadd.f32 %v1245_v52, %v1125_v3  ;;  %v1248_v56 = vpop.f32.mrb[16].mxu1 }
 0x44a   : > { %v1269_v58 = vmax.f32 %v1261_v54, 0.0  ;;  %v1250_v59 = vpop.f32.mrb[17].mxu1  ;;  %v1249_v0 = vadd.f32 %v1248_v56, %v1151_v57 }
 0x44b   : > { %v1270_v61 = vmax.f32 %v1262_v55, 0.0  ;;  %v1251_v62 = vadd.f32 %v1250_v59, %v1151_v57 }
 0x44c   : > { %v1686_v6 = vpack.c.bf16 %v1269_v58, %v1267_v63  ;;  %v1263_v12 = vadd.f32 %v1249_v0, %v1126_v35 }
 0x44d   : > { %v1254_v4 = vpop.f32.mrb[18].mxu1  ;;  %v1684_v5 = vpack.c.bf16 %v1270_v61, %v1268_v60  ;;  %v1264_v10 = vadd.f32 %v1251_v62, %v1127_v33  ;;  %v1420_v62 = vld [vmem:[%s2104_s13] sm:$0x7] }
 0x44e   : > { %v1255_v7 = vadd.f32 %v1254_v4, %v1156_v1  ;;  %v1256_v8 = vpop.f32.mrb[19].mxu1  ;;  %v1271_v15 = vmax.f32 %v1263_v12, 0.0 }
 0x44f   : > { %v1257_v11 = vadd.f32 %v1256_v8, %v1156_v1  ;;  %1685 = vmatprep.subr.bf16.mxu0 %v1684_v5  ;;  %v1272_v18 = vmax.f32 %v1264_v10, 0.0 }
 0x450   : > { %v1265_v13 = vadd.f32 %v1255_v7, %v1128_v32  ;;  %1687 = vmatpush1.bf16.msra.mxu0 %v1686_v6 }
 0x451   : > { %v1266_v9 = vadd.f32 %v1257_v11, %v1129_v34 }
 0x452   : > { %v1273_v14 = vmax.f32 %v1265_v13, 0.0 }
 0x453   : > { %v1274_v2 = vmax.f32 %v1266_v9, 0.0 }
 0x454   : > { %v1690_v3 = vpack.c.bf16 %v1273_v14, %v1271_v15 }
 0x455   : > { %v1688_v19 = vpack.c.bf16 %v1274_v2, %v1272_v18 }
 0x457   : > { %1689 = vmatprep.subr.bf16.mxu0 %v1688_v19 }
 0x458   : > { %1691 = vmatpush1.bf16.msra.mxu0 %v1690_v3 }
 0x45b   : > { %1642 = vmatmul.mubr.msk.f32.vlgmr.msra.gmra.mrb[12].mxu0 %vm734_vm0, %v1275_v16 }
 0x45c   : > { %1385 = vmatprep.mubr.f32.mxu0 %v1763_v17 }
 0x45f   : > { %1643 = vmatmul.mubr.msk.f32.gmra.mrb[14].mxu0 %vm734_vm0, %v1276_v20 }
 0x460   : > { %1391 = vmatprep.mubr.f32.mxu0 %v1763_v17 }
 0x463   : > { %1644 = vmatmul.mubr.msk.f32.gmra.mrb[16].mxu0 %vm734_vm0, %v1277_v21 }
 0x464   : > { %1397 = vmatprep.mubr.f32.mxu0 %v1763_v17  ;;  %v1296_v17 = vpop.permute.xlu0 %1295 }
 0x467   : > { %1645 = vmatmul.mubr.msk.f32.gmra.mrb[18].mxu0 %vm734_vm0, %v1278_v22 }
 0x52e   : > { %v1381_v24 = vpop.f32.mrb[12].mxu0 }
 0x52f   : > { %v1382_v25 = vadd.f32 %v1381_v24, %v1286_v23  ;;  %v1383_v26 = vpop.f32.mrb[13].mxu0 }
 0x530   : > { %v1384_v27 = vadd.f32 %v1383_v26, %v1286_v23 }
 0x531   : > { %v1404_v30 = vadd.f32 %v1382_v25, %v1267_v63  ;;  %v1425_v63 = vpop.permute.xlu0 %1424 }
 0x532   : > { %v1387_v29 = vpop.f32.mrb[14].mxu0  ;;  %v1405_v33 = vadd.f32 %v1384_v27, %v1268_v60 }
 0x533   : > { %v1388_v31 = vadd.f32 %v1387_v29, %v1291_v28  ;;  %v1389_v32 = vpop.f32.mrb[15].mxu0  ;;  %v1412_v38 = vmax.f32 %v1404_v30, 0.0 }
 0x534   : > { %v1390_v34 = vadd.f32 %v1389_v32, %v1291_v28  ;;  %v1413_v42 = vmax.f32 %v1405_v33, 0.0 }
 0x535   : > { %v1406_v35 = vadd.f32 %v1388_v31, %v1269_v58 }
 0x536   : > { %v1407_v36 = vadd.f32 %v1390_v34, %v1270_v61  ;;  %v1393_v37 = vpop.f32.mrb[16].mxu0 }
 0x537   : > { %v1414_v39 = vmax.f32 %v1406_v35, 0.0  ;;  %v1394_v40 = vadd.f32 %v1393_v37, %v1296_v17  ;;  %v1395_v41 = vpop.f32.mrb[17].mxu0 }
 0x538   : > { %v1415_v43 = vmax.f32 %v1407_v36, 0.0  ;;  %v1396_v44 = vadd.f32 %v1395_v41, %v1296_v17 }
 0x539   : > { %v1694_v45 = vpack.c.bf16 %v1414_v39, %v1412_v38  ;;  %v1408_v49 = vadd.f32 %v1394_v40, %v1271_v15 }
 0x53a   : > { %v1399_v47 = vpop.f32.mrb[18].mxu0  ;;  %v1692_v48 = vpack.c.bf16 %v1415_v43, %v1413_v42  ;;  %v1409_v52 = vadd.f32 %v1396_v44, %v1272_v18 }
 0x53b   : > { %v1400_v50 = vadd.f32 %v1399_v47, %v1301_v46  ;;  %v1401_v51 = vpop.f32.mrb[19].mxu0  ;;  %v1416_v56 = vmax.f32 %v1408_v49, 0.0 }
 0x53c   : > { %v1402_v53 = vadd.f32 %v1401_v51, %v1301_v46  ;;  %1693 = vmatprep.subr.bf16.mxu1 %v1692_v48  ;;  %v1417_v58 = vmax.f32 %v1409_v52, 0.0 }
 0x53d   : > { %v1410_v54 = vadd.f32 %v1400_v50, %v1273_v14  ;;  %1695 = vmatpush1.bf16.msra.mxu1 %v1694_v45 }
 0x53e   : > { %v1411_v55 = vadd.f32 %v1402_v53, %v1274_v2 }
 0x53f   : > { %v1418_v57 = vmax.f32 %v1410_v54, 0.0 }
 0x540   : > { %v1419_v59 = vmax.f32 %v1411_v55, 0.0 }
 0x541   : > { %v1698_v60 = vpack.c.bf16 %v1418_v57, %v1416_v56 }
 0x542   : > { %v1696_v61 = vpack.c.bf16 %v1419_v59, %v1417_v58 }
 0x544   : > { %1697 = vmatprep.subr.bf16.mxu1 %v1696_v61 }
 0x545   : > { %1699 = vmatpush1.bf16.msra.mxu1 %v1698_v60 }
 0x548   : > { %1646 = vmatmul.mubr.msk.f32.vlgmr.msra.gmra.mrb[20].mxu1 %vm734_vm0, %v1420_v62 }
 0x61b   : > { %v1496_v0 = vpop.f32.mrb[20].mxu1 }
 0x61c   : > { %v1497_v1 = vadd.f32 %v1496_v0, %v1425_v63  ;;  %v1498_v4 = vpop.f32.mrb[21].mxu1 }
 0x61d   : > { %v1499_v5 = vadd.f32 %v1498_v4, %v1425_v63 }
 0x61f   : > { %v1503_v6 = vcombine.low %v1497_v1, %v1499_v5 }
 0x621   : > { %1505 = vst [vmem:[%s558_s25] sm:$0x77] %v1503_v6 }
 0x622 PF: > { %s25_s20 = sadd.s32 1, %s1759_s20   ;;  %s2109_s18 = smov %s1755_s19 }
 0x623   : > { %p22_p5 = scmp.ge.s32.totalorder %s25_s20, 4   ;;  %s2110_s19 = smov %s2112_s21 }
 0x625   :  { %24 = sbr.rel (!%p22_p5) target bundleno = 2 (0x2), region = 116 }

</bundles_post_ra>
